<compile_context>
chip_gen: v7x
topology: tpu7x:2x2x1
jax: 0.10.0
libtpu: 0.0.40
codegen_flags: <defaults>
</compile_context>

<pallas_src>
import functools

import jax
import jax.numpy as jnp
from jax.experimental import pallas as pl
from jax.experimental.pallas import tpu as pltpu


def _cliff_kernel(x_ref, o_ref, *, k):
    # Elementwise clamp(k * x, 0, 1); read/write native dtype, compute f32.
    x = x_ref[...].astype(jnp.float32)
    o_ref[...] = jnp.clip(x * jnp.float32(k), 0.0, 1.0).astype(o_ref.dtype)


_MAX_COLS = 8192                       # widest lane-dense slab we will form
_VMEM_LIMIT_BYTES = 32 * 1024 * 1024   # safe on v5e/v6e/v7x
_core_parallel_ok = None               # tri-state cache: None / True / False


def _run(x2d, *, k, tile_r, cols, grid, n_bytes, semantics):
    rows = x2d.shape[0]
    return pl.pallas_call(
        functools.partial(_cliff_kernel, k=k),
        out_shape=jax.ShapeDtypeStruct((rows, cols), x2d.dtype),
        grid=grid,
        in_specs=[pl.BlockSpec((tile_r, cols), lambda i: (i, 0))],
        out_specs=pl.BlockSpec((tile_r, cols), lambda i: (i, 0)),
        compiler_params=pltpu.CompilerParams(
            dimension_semantics=(semantics,),
            vmem_limit_bytes=_VMEM_LIMIT_BYTES),
        cost_estimate=pl.CostEstimate(
            flops=3 * x2d.size, transcendentals=0, bytes_accessed=n_bytes),
    )(x2d)


def my_cliff(x: jax.Array, k: float = 1.0, *,
             block_bytes: int = 4 * 1024 * 1024) -> jax.Array:
    """Elementwise clamp(k * x, 0, 1) via a Pallas TPU kernel (any shape)."""
    global _core_parallel_ok
    orig_shape = x.shape
    orig_dtype = x.dtype
    n = x.size
    itemsize = jnp.dtype(orig_dtype).itemsize
    # Native sublane packing: 8 rows (4-byte), 16 (2-byte), 32 (1-byte).
    sub = max(8, 32 // max(1, itemsize))

    # Widest multiple-of-128 column count that divides n -> no pad, no copy.
    cols = None
    for m in range(_MAX_COLS // 128, 0, -1):
        c = 128 * m
        if n % c == 0:
            cols = c
            break

    if cols is None:
        # Last resort for awkward sizes: one pad pass to a multiple of 1024
        # (kept lane-dense, few grid steps).
        cols = 1024
        n_pad = pl.cdiv(n, cols) * cols
        x_flat = jnp.pad(jnp.ravel(x), (0, n_pad - n))
        padded = True
    else:
        n_pad = n
        x_flat = jnp.reshape(x, (-1,))  # contiguous flatten: bitcast, no copy
        padded = False

    rows = n_pad // cols
    x2d = x_flat.reshape(rows, cols)

    # ~4 MiB blocks -> (in + out) x 2 pipeline buffers = 16 MiB VMEM.
    max_tile_r = max(sub, (block_bytes // (cols * itemsize)) // sub * sub)
    tile_r = rows if rows <= max_tile_r else max_tile_r
    grid = (pl.cdiv(rows, tile_r),)

    run = functools.partial(
        _run, x2d, k=float(k), tile_r=tile_r, cols=cols, grid=grid,
        n_bytes=2 * n_pad * itemsize)

    core_parallel = getattr(pltpu, "CORE_PARALLEL", None)
    if _core_parallel_ok is None and core_parallel is not None:
        # Probe once: CORE_PARALLEL splits the row-block stream across both
        # TensorCores on v7x; fall back cleanly where it is unsupported.
        try:
            out2d = jax.block_until_ready(run(semantics=core_parallel))
            _core_parallel_ok = True
        except Exception:
            _core_parallel_ok = False
            out2d = run(semantics="parallel")
    elif _core_parallel_ok and core_parallel is not None:
        out2d = run(semantics=core_parallel)
    else:
        out2d = run(semantics="parallel")

    if padded:
        return out2d.reshape(-1)[:n].reshape(orig_shape)
    return out2d.reshape(orig_shape)  # bitcast, no copy


if __name__ == "__main__":
    key = jax.random.PRNGKey(0)
    k1, k2, k3 = jax.random.split(key, 3)

    # 1) Small NCHW-style f32 input (typical activation usage), default k=1.
    x = jax.random.normal(k1, (2, 4, 16, 16), dtype=jnp.float32) * 2.0
    out = jax.block_until_ready(my_cliff(x, k=1))
    ref = jnp.clip(1.0 * x, 0.0, 1.0)
    assert out.shape == x.shape and out.dtype == x.dtype
    assert jnp.allclose(out, ref, atol=1e-6), "mismatch vs reference (f32)"

    # 2) Ragged bf16 shape -> exercises the single-pad fallback path.
    x2 = (jax.random.normal(k2, (3, 5, 7)) * 2.0).astype(jnp.bfloat16)
    out2 = jax.block_until_ready(my_cliff(x2, k=0.5))
    ref2 = jnp.clip(0.5 * x2.astype(jnp.float32), 0.0, 1.0)
    assert out2.shape == x2.shape and out2.dtype == x2.dtype
    assert jnp.allclose(out2.astype(jnp.float32), ref2, atol=1e-2), \
        "mismatch vs reference (bf16)"

    # 3) Multi-block grid with a ragged (masked) last row-block:
    #    n = 2*67*128 -> cols=256, rows=67; 64 KiB blocks -> tile_r=64, grid=2.
    x3 = jax.random.normal(k3, (2, 67, 128), dtype=jnp.float32) * 3.0
    out3 = jax.block_until_ready(my_cliff(x3, k=2.0, block_bytes=64 * 1024))
    ref3 = jnp.clip(2.0 * x3, 0.0, 1.0)
    assert out3.shape == x3.shape and out3.dtype == x3.dtype
    assert jnp.allclose(out3, ref3, atol=1e-6), "mismatch vs reference (grid)"

    print("KERNEL_OK")
</pallas_src>

<mosaic_0001>
module attributes {stable_mosaic.version = 11 : i64} {
  func.func @_cliff_kernel(%arg0: i32, %arg1: memref<1x2048xf32, #tpu.memory_space<vmem>>, %arg2: memref<1x2048xf32, #tpu.memory_space<vmem>>) attributes {dimension_semantics = [#tpu.dimension_semantics<core_parallel>], iteration_bounds = array<i64: 1>, scalar_prefetch = 0 : i64, scratch_operands = 0 : i64, tpu.core_type = #tpu.core_type<tc>, window_params = [{transform_indices = @transform_0, window_bounds = array<i64: 1, 2048>}, {transform_indices = @transform_1, window_bounds = array<i64: 1, 2048>}]} {
    %c0 = arith.constant 0 : index
    %c0_0 = arith.constant 0 : index
    %0 = vector.load %arg1[%c0, %c0_0] : memref<1x2048xf32, #tpu.memory_space<vmem>>, vector<1x2048xf32>
    %cst = arith.constant 1.000000e+00 : f32
    %1 = vector.broadcast %cst : f32 to vector<1x2048xf32>
    %2 = arith.mulf %0, %1 : vector<1x2048xf32>
    %cst_1 = arith.constant 0.000000e+00 : f32
    %cst_2 = arith.constant 1.000000e+00 : f32
    %3 = vector.broadcast %cst_1 : f32 to vector<1x2048xf32>
    %4 = arith.maximumf %3, %2 : vector<1x2048xf32>
    %5 = vector.broadcast %cst_2 : f32 to vector<1x2048xf32>
    %6 = arith.minimumf %5, %4 : vector<1x2048xf32>
    %c0_3 = arith.constant 0 : index
    %c0_4 = arith.constant 0 : index
    %7 = vector.load %arg2[%c0_3, %c0_4] : memref<1x2048xf32, #tpu.memory_space<vmem>>, vector<1x2048xf32>
    tpu.vector_store %arg2[%c0_3, %c0_4], %6 {strides = array<i32>} : memref<1x2048xf32, #tpu.memory_space<vmem>>, vector<1x2048xf32>,
    return
  }
  func.func @transform_0(%arg0: i32) -> (i32, i32) {
    %c0_i32 = arith.constant 0 : i32
    %c0_i32_0 = arith.constant 0 : i32
    return %arg0, %c0_i32 : i32, i32
  }
  func.func @transform_1(%arg0: i32) -> (i32, i32) {
    %c0_i32 = arith.constant 0 : i32
    %c0_i32_0 = arith.constant 0 : i32
    return %arg0, %c0_i32 : i32, i32
  }
}

module attributes {stable_mosaic.version = 11 : i64} {
  func.func @_cliff_kernel(%arg0: i32, %arg1: memref<1x2048xf32, #tpu.memory_space<vmem>>, %arg2: memref<1x2048xf32, #tpu.memory_space<vmem>>) attributes {dimension_semantics = [#tpu.dimension_semantics<parallel>], iteration_bounds = array<i64: 1>, scalar_prefetch = 0 : i64, scratch_operands = 0 : i64, tpu.core_type = #tpu.core_type<tc>, window_params = [{transform_indices = @transform_0, window_bounds = array<i64: 1, 2048>}, {transform_indices = @transform_1, window_bounds = array<i64: 1, 2048>}]} {
    %c0 = arith.constant 0 : index
    %c0_0 = arith.constant 0 : index
    %0 = vector.load %arg1[%c0, %c0_0] : memref<1x2048xf32, #tpu.memory_space<vmem>>, vector<1x2048xf32>
    %cst = arith.constant 1.000000e+00 : f32
    %1 = vector.broadcast %cst : f32 to vector<1x2048xf32>
    %2 = arith.mulf %0, %1 : vector<1x2048xf32>
    %cst_1 = arith.constant 0.000000e+00 : f32
    %cst_2 = arith.constant 1.000000e+00 : f32
    %3 = vector.broadcast %cst_1 : f32 to vector<1x2048xf32>
    %4 = arith.maximumf %3, %2 : vector<1x2048xf32>
    %5 = vector.broadcast %cst_2 : f32 to vector<1x2048xf32>
    %6 = arith.minimumf %5, %4 : vector<1x2048xf32>
    %c0_3 = arith.constant 0 : index
    %c0_4 = arith.constant 0 : index
    %7 = vector.load %arg2[%c0_3, %c0_4] : memref<1x2048xf32, #tpu.memory_space<vmem>>, vector<1x2048xf32>
    tpu.vector_store %arg2[%c0_3, %c0_4], %6 {strides = array<i32>} : memref<1x2048xf32, #tpu.memory_space<vmem>>, vector<1x2048xf32>,
    return
  }
  func.func @transform_0(%arg0: i32) -> (i32, i32) {
    %c0_i32 = arith.constant 0 : i32
    %c0_i32_0 = arith.constant 0 : i32
    return %arg0, %c0_i32 : i32, i32
  }
  func.func @transform_1(%arg0: i32) -> (i32, i32) {
    %c0_i32 = arith.constant 0 : i32
    %c0_i32_0 = arith.constant 0 : i32
    return %arg0, %c0_i32 : i32, i32
  }
}

</mosaic_0001>

<bundles_post_ra>
// kernel: tpu_custom_call.1
= control target key start
LH: loop header
LB: loop body
LE: loop exit
PB: predicated region body
PF: predicated region fallthrough
CT: control target
= control target key end

     0   :  { %s126_s6 = sld [smem:[#allocation0]]   ;;  %s151_s0 = inlined_call_operand.hbm [shape: f32[1,2048], index: 0, kind: input, shape index: {}]   ;;  %s152_s1 = inlined_call_operand.hbm [shape: f32[1,2048], index: 1, kind: output, shape index: {}]  }
   0x1   :  { %6 = vsyncpa [#allocation3], 0 }
   0x2   :  { %7 = vsyncpa [#allocation4], 0  ;;  %s114_s11 = smov [#allocation2]   ;;  %s64_s16 = scalar_lea.hbm %s151_s0, 256 }
   0x3   :  { %s17_s12 = sshll.u32 %s114_s11, 4  ;;  %s18_s12 = int_to_ptr.vmem [resolvable:$true] %s17_s12 }
   0x6   :  { %s58_s7 = sshll.u32 %s126_s6, 8 }
   0x7   :  { %s15_s10 = scalar_lea.hbm %s151_s0, %s58_s7 }
   0x8   :  { %s62_s13 = scalar_lea.hbm %s15_s10, 256  ;;  %p65_p1 = scmp.lt.u32.totalorder %s15_s10, %s151_s0 }
   0x9   :  { %p63_p0 = scmp.ne.s32.totalorder %s15_s10, %s62_s13  ;;  %p66_p2 = scmp.lt.u32.totalorder %s64_s16, %s62_s13 }
   0xa   :  { %p68_p4 = scmp.lt.u32.totalorder %s62_s13, %s15_s10 }
   0xb   :  { %p67_p3 = por %p66_p2, %p65_p1 }
   0xd   :  { %p69_p5 = por %p68_p4, %p67_p3 }
   0xf   :  { %p70_p6 = pnand %p69_p5, %p63_p0 }
  0x11   :  { %73 = shalt.err (!%p70_p6)
}
  0x12   :  { %s74_s19 = scalar_lea.vmem %s18_s12, 256  ;;  %p79_p8 = scmp.lt.s32.totalorder %s18_s12, %s18_s12 }
  0x13   :  { %p75_p7 = scmp.ne.s32.totalorder %s18_s12, %s74_s19  ;;  %p80_p9 = scmp.lt.s32.totalorder %s74_s19, %s74_s19 }
  0x15   :  { %p81_p10 = por %p80_p9, %p79_p8 }
  0x17   :  { %p82_p11 = pnand %p81_p10, %p75_p7 }
  0x19   :  { %85 = shalt.err (!%p82_p11)
}
  0x1a   :  { %20 = dma.hbm_to_vmem [thread:$0]  %s15_s10, 256, %s18_s12, [#allocation3]  }
  0x1b   :  { %110 = dma.done.wait [#allocation3], 256  }
  0x1c   :  { %111 = vsyncadd [#allocation3], 4294967040  ;;  %v24_v0 = vld [vmem:[#allocation2] sm:$0xff]  ;;  %v25_v1 = vld [vmem:[#allocation2 + $0x8] sm:$0xff]  ;;  %s115_s0 = smov [#allocation5]   ;;  %s39_s23 = scalar_lea.hbm %s152_s1, %s58_s7 }
  0x1d   :  { %s41_s20 = sshll.u32 %s115_s0, 4  ;;  %v26_v2 = vmax.f32 %v24_v0, 0.0  ;;  %v27_v3 = vmax.f32 %v25_v1, 0.0  ;;  %s42_s20 = int_to_ptr.vmem [resolvable:$true] %s41_s20 }
  0x1e   :  { %s86_s24 = scalar_lea.vmem %s42_s20, 256  ;;  %p91_p13 = scmp.lt.s32.totalorder %s42_s20, %s42_s20 }
  0x1f   :  { %v28_v4 = vmin.f32 %v26_v2, 1.0  ;;  %v29_v5 = vmin.f32 %v27_v3, 1.0  ;;  %p87_p12 = scmp.ne.s32.totalorder %s42_s20, %s86_s24  ;;  %p92_p0 = scmp.lt.s32.totalorder %s86_s24, %s86_s24 }
  0x21   :  { %30 = vst [vmem:[#allocation5] sm:$0xff] %v28_v4  ;;  %31 = vst [vmem:[#allocation5 + $0x8] sm:$0xff] %v29_v5  ;;  %p93_p1 = por %p92_p0, %p91_p13 }
  0x23   :  { %p94_p2 = pnand %p93_p1, %p87_p12 }
  0x25   :  { %97 = shalt.err (!%p94_p2)
}
  0x26   :  { %s98_s25 = scalar_lea.hbm %s39_s23, 256  ;;  %s100_s28 = scalar_lea.hbm %s152_s1, 256 }
  0x27   :  { %p99_p3 = scmp.ne.s32.totalorder %s39_s23, %s98_s25  ;;  %p101_p4 = scmp.lt.u32.totalorder %s39_s23, %s152_s1 }
  0x28   :  { %p102_p5 = scmp.lt.u32.totalorder %s100_s28, %s98_s25  ;;  %p104_p7 = scmp.lt.u32.totalorder %s98_s25, %s39_s23 }
  0x2a   :  { %p103_p6 = por %p102_p5, %p101_p4 }
  0x2c   :  { %p105_p8 = por %p104_p7, %p103_p6 }
  0x2e   :  { %p106_p9 = pnand %p105_p8, %p99_p3 }
  0x30   :  { %109 = shalt.err (!%p106_p9)
}
  0x31   :  { %44 = dma.vmem_to_hbm [thread:$0]  %s42_s20, 256, %s39_s23, [#allocation4]  }
  0x32   :  { %112 = dma.done.wait [#allocation4], 256  }
  0x33   :  { %113 = vsyncadd [#allocation4], 4294967040 }
  0x34   :  { %48 = vsyncpa [#allocation3], 1 }
  0x35   :  { %49 = vsyncpa [#allocation4], 1 }

// kernel: tpu_custom_call.1
= control target key start
LH: loop header
LB: loop body
LE: loop exit
PB: predicated region body
PF: predicated region fallthrough
CT: control target
= control target key end

     0   :  { %6 = vsyncpa [#allocation3], 0  ;;  %s130_s0 = inlined_call_operand.hbm [shape: f32[1,2048], index: 0, kind: input, shape index: {}]   ;;  %s131_s1 = inlined_call_operand.hbm [shape: f32[1,2048], index: 1, kind: output, shape index: {}]  }
   0x1   :  { %7 = vsyncpa [#allocation4], 0  ;;  %s94_s6 = smov [#allocation2]   ;;  %s46_s10 = scalar_lea.hbm %s130_s0, 256 }
   0x2   :  { %s14_s7 = sshll.u32 %s94_s6, 4  ;;  %p47_p0 = scmp.ne.s32.totalorder %s130_s0, %s46_s10  ;;  %s15_s7 = int_to_ptr.vmem [resolvable:$true] %s14_s7 }
   0x3   :  { %p50_p1 = scmp.lt.u32.totalorder %s46_s10, %s130_s0 }
   0x5   :  { %p52_p2 = pnand %p50_p1, %p47_p0 }
   0x7   :  { %55 = shalt.err (!%p52_p2)
}
   0x8   :  { %s56_s15 = scalar_lea.vmem %s15_s7, 256  ;;  %p61_p4 = scmp.lt.s32.totalorder %s15_s7, %s15_s7 }
   0x9   :  { %p57_p3 = scmp.ne.s32.totalorder %s15_s7, %s56_s15  ;;  %p62_p5 = scmp.lt.s32.totalorder %s56_s15, %s56_s15 }
   0xb   :  { %p63_p6 = por %p62_p5, %p61_p4 }
   0xd   :  { %p64_p7 = pnand %p63_p6, %p57_p3 }
   0xf   :  { %67 = shalt.err (!%p64_p7)
}
  0x10   :  { %17 = dma.hbm_to_vmem [thread:$0]  %s130_s0, 256, %s15_s7, [#allocation3]  }
  0x11   :  { %90 = dma.done.wait [#allocation3], 256  }
  0x12   :  { %91 = vsyncadd [#allocation3], 4294967040  ;;  %v21_v0 = vld [vmem:[#allocation2] sm:$0xff]  ;;  %v22_v1 = vld [vmem:[#allocation2 + $0x8] sm:$0xff]  ;;  %s95_s18 = smov [#allocation5]  }
  0x13   :  { %s35_s19 = sshll.u32 %s95_s18, 4  ;;  %v23_v2 = vmax.f32 %v21_v0, 0.0  ;;  %v24_v3 = vmax.f32 %v22_v1, 0.0  ;;  %s36_s19 = int_to_ptr.vmem [resolvable:$true] %s35_s19 }
  0x14   :  { %s68_s20 = scalar_lea.vmem %s36_s19, 256  ;;  %p73_p9 = scmp.lt.s32.totalorder %s36_s19, %s36_s19 }
  0x15   :  { %v25_v4 = vmin.f32 %v23_v2, 1.0  ;;  %v26_v5 = vmin.f32 %v24_v3, 1.0  ;;  %p69_p8 = scmp.ne.s32.totalorder %s36_s19, %s68_s20  ;;  %p74_p10 = scmp.lt.s32.totalorder %s68_s20, %s68_s20 }
  0x17   :  { %27 = vst [vmem:[#allocation5] sm:$0xff] %v25_v4  ;;  %28 = vst [vmem:[#allocation5 + $0x8] sm:$0xff] %v26_v5  ;;  %p75_p11 = por %p74_p10, %p73_p9 }
  0x19   :  { %p76_p12 = pnand %p75_p11, %p69_p8 }
  0x1b   :  { %79 = shalt.err (!%p76_p12)
}
  0x1c   :  { %s80_s22 = scalar_lea.hbm %s131_s1, 256 }
  0x1d   :  { %p81_p13 = scmp.ne.s32.totalorder %s131_s1, %s80_s22  ;;  %p84_p0 = scmp.lt.u32.totalorder %s80_s22, %s131_s1 }
  0x1f   :  { %p86_p1 = pnand %p84_p0, %p81_p13 }
  0x21   :  { %89 = shalt.err (!%p86_p1)
}
  0x22   :  { %38 = dma.vmem_to_hbm [thread:$0]  %s36_s19, 256, %s131_s1, [#allocation4]  }
  0x23   :  { %92 = dma.done.wait [#allocation4], 256  }
  0x24   :  { %93 = vsyncadd [#allocation4], 4294967040 }
  0x25   :  { %42 = vsyncpa [#allocation3], 1 }
  0x26   :  { %43 = vsyncpa [#allocation4], 1 }

</bundles_post_ra>
